<compile_context>
chip_gen: v5e
topology: v5e:2x2
jax: 0.10.0
libtpu: 0.0.40
codegen_flags: <defaults>
</compile_context>

<pallas_src>
import jax
import jax.numpy as jnp
from jax.experimental import pallas as pl
from jax.experimental.pallas import tpu as pltpu


def anet_kernel(xt_ref, w_ref, b_ref, o_ref):
    # xt_ref: (F, TB) VMEM  -- batch on lanes (lane-dense), features on sublanes
    # w_ref : (F, 1)  VMEM  -- broadcast along lanes
    # b_ref : (1, 1)  SMEM scalar
    # o_ref : (1, TB) VMEM  -- lane-dense output row (unmasked vst)
    prod = xt_ref[...] * w_ref[...]               # VPU: all 128 lanes busy on batch
    z = jnp.sum(prod, axis=0, keepdims=True)      # XLU cross-sublane reduce -> (1, TB)
    z = z + b_ref[0, 0]
    # sigmoid = 1 / (1 + exp(-z)): exp on EUP, approx reciprocal also on EUP.
    o_ref[...] = pl.reciprocal(1.0 + jnp.exp(-z), approx=True).astype(o_ref.dtype)


def anet_forward(x, w, b, *, max_tile_b=512):
    """ANet forward: sigmoid(x @ w + b).

    x: [B, F] f32, w: [F, 1] f32 (transpose of PyTorch's [1, F] weight),
    b: [1, 1] f32  ->  [B, 1] f32
    """
    B, F = x.shape
    assert w.shape == (F, 1) and b.shape == (1, 1)

    # --- tile-size selection (batch lives on lanes -> multiples of 128) -------
    lane = 128
    Bp = pl.cdiv(B, lane) * lane
    TB = min(Bp, max_tile_b)
    # Keep the double-buffered x tile well under v7x's scoped-VMEM budget
    # (64 MiB physical / 32 MiB default): 2 buffers * F * TB * 4B <= ~8 MiB.
    vmem_budget = 8 * 1024 * 1024
    tb_cap = max(lane, (vmem_budget // (2 * 4 * max(F, 1))) // lane * lane)
    TB = min(TB, tb_cap)
    Bp = pl.cdiv(Bp, TB) * TB          # pad batch up to a whole number of tiles
    n_tiles = Bp // TB

    # --- layout: batch on lanes (lane-dense loads AND stores) -----------------
    xt = x.T                                           # (F, B)
    if Bp != B:
        xt = jnp.pad(xt, ((0, 0), (0, Bp - B)))        # (F, Bp)

    cost = pl.CostEstimate(
        flops=2 * B * F,
        transcendentals=B,
        bytes_accessed=B * F * 4 + F * 4 + B * 4,
    )

    out = pl.pallas_call(
        anet_kernel,
        out_shape=jax.ShapeDtypeStruct((1, Bp), jnp.float32),
        grid_spec=pltpu.PrefetchScalarGridSpec(
            num_scalar_prefetch=0,
            grid=(n_tiles,),
            in_specs=[
                pl.BlockSpec((F, TB), lambda i: (0, i)),   # x^T tile -> VMEM (pipelined)
                pl.BlockSpec((F, 1), lambda i: (0, 0)),    # w        -> VMEM (resident)
                pl.BlockSpec(memory_space=pltpu.SMEM),     # b        -> SMEM scalar
            ],
            out_specs=pl.BlockSpec((1, TB), lambda i: (0, i)),
        ),
        compiler_params=pltpu.CompilerParams(
            dimension_semantics=("parallel",),   # independent batch tiles (v7x: 2 TCs)
        ),
        cost_estimate=cost,
    )(xt, w, b)

    return out[:, :B].T                                  # (B, 1)


if __name__ == "__main__":
    key = jax.random.PRNGKey(0)
    kx, kw, kb = jax.random.split(key, 3)

    B = 8            # batch
    in_feature = 32  # in_feature of ANet

    # Deterministic inputs / parameters (PyTorch-like uniform(-1/sqrt(F), 1/sqrt(F))).
    x = jax.random.normal(kx, (B, in_feature), dtype=jnp.float32)
    bound = 1.0 / (in_feature ** 0.5)
    w = jax.random.uniform(kw, (in_feature, 1), minval=-bound, maxval=bound,
                           dtype=jnp.float32)
    b = jax.random.uniform(kb, (1, 1), minval=-bound, maxval=bound,
                           dtype=jnp.float32)

    out = anet_forward(x, w, b)
    out = jax.block_until_ready(out)

    # Reference check in plain JAX (loose tolerance: EUP approx reciprocal).
    ref = jax.nn.sigmoid(x @ w + b[0, 0])
    assert out.shape == (B, 1)
    assert jnp.allclose(out, ref, atol=5e-3, rtol=5e-3), float(jnp.max(jnp.abs(out - ref)))

    print("KERNEL_OK")
</pallas_src>

<mosaic_0001>
module attributes {stable_mosaic.version = 11 : i64} {
  func.func @anet_kernel(%arg0: i32, %arg1: memref<32x128xf32, #tpu.memory_space<vmem>>, %arg2: memref<32x1xf32, #tpu.memory_space<vmem>>, %arg3: memref<1x1xf32, #tpu.memory_space<smem>>, %arg4: memref<1x128xf32, #tpu.memory_space<vmem>>) attributes {dimension_semantics = [#tpu.dimension_semantics<parallel>], iteration_bounds = array<i64: 1>, scalar_prefetch = 0 : i64, scratch_operands = 0 : i64, tpu.core_type = #tpu.core_type<tc>, window_params = [{transform_indices = @transform_0, window_bounds = array<i64: 32, 128>}, {pipeline_mode = #tpu.pipeline_mode<synchronous>, transform_indices = @transform_1, window_bounds = array<i64: 32, 1>}, {transform_indices = @transform_2, window_bounds = array<i64: 1, 1>}, {transform_indices = @transform_3, window_bounds = array<i64: 1, 128>}]} {
    %c0 = arith.constant 0 : index
    %c0_0 = arith.constant 0 : index
    %0 = vector.load %arg1[%c0, %c0_0] : memref<32x128xf32, #tpu.memory_space<vmem>>, vector<32x128xf32>
    %c0_1 = arith.constant 0 : index
    %c0_2 = arith.constant 0 : index
    %1 = vector.load %arg2[%c0_1, %c0_2] : memref<32x1xf32, #tpu.memory_space<vmem>>, vector<32x1xf32>
    %2 = vector.broadcast %1 : vector<32x1xf32> to vector<32x128xf32>
    %3 = arith.mulf %0, %2 : vector<32x128xf32>
    %cst = arith.constant dense<0.000000e+00> : vector<128xf32>
    %4 = vector.multi_reduction <add>, %3, %cst [0] : vector<32x128xf32> to vector<128xf32>
    %5 = vector.shape_cast %4 : vector<128xf32> to vector<1x128xf32>
    %c0_3 = arith.constant 0 : index
    %c0_4 = arith.constant 0 : index
    %6 = memref.load %arg3[%c0_3, %c0_4] : memref<1x1xf32, #tpu.memory_space<smem>>
    %7 = vector.broadcast %6 : f32 to vector<1x128xf32>
    %8 = arith.addf %5, %7 : vector<1x128xf32>
    %cst_5 = arith.constant 0.000000e+00 : f32
    %9 = vector.broadcast %cst_5 : f32 to vector<1x128xf32>
    %10 = arith.subf %9, %8 : vector<1x128xf32>
    %11 = math.exp %10 : vector<1x128xf32>
    %cst_6 = arith.constant 1.000000e+00 : f32
    %12 = vector.broadcast %cst_6 : f32 to vector<1x128xf32>
    %13 = arith.addf %12, %11 : vector<1x128xf32>
    %14 = tpu.reciprocal %13 {approx = true} : vector<1x128xf32> -> vector<1x128xf32>
    %c0_7 = arith.constant 0 : index
    %c0_8 = arith.constant 0 : index
    %15 = vector.load %arg4[%c0_7, %c0_8] : memref<1x128xf32, #tpu.memory_space<vmem>>, vector<1x128xf32>
    tpu.vector_store %arg4[%c0_7, %c0_8], %14 {strides = array<i32>} : memref<1x128xf32, #tpu.memory_space<vmem>>, vector<1x128xf32>,
    return
  }
  func.func @transform_0(%arg0: i32) -> (i32, i32) {
    %c0_i32 = arith.constant 0 : i32
    %c0_i32_0 = arith.constant 0 : i32
    return %c0_i32, %arg0 : i32, i32
  }
  func.func @transform_1(%arg0: i32) -> (i32, i32) {
    %c0_i32 = arith.constant 0 : i32
    %c0_i32_0 = arith.constant 0 : i32
    %c0_i32_1 = arith.constant 0 : i32
    return %c0_i32, %c0_i32_0 : i32, i32
  }
  func.func @transform_2(%arg0: i32) -> (i32, i32) {
    %c0_i32 = arith.constant 0 : i32
    %c0_i32_0 = arith.constant 0 : i32
    %c0_i32_1 = arith.constant 0 : i32
    return %c0_i32, %c0_i32_0 : i32, i32
  }
  func.func @transform_3(%arg0: i32) -> (i32, i32) {
    %c0_i32 = arith.constant 0 : i32
    %c0_i32_0 = arith.constant 0 : i32
    return %c0_i32, %arg0 : i32, i32
  }
}

</mosaic_0001>

<bundles_post_ra>
// kernel: tpu_custom_call.1
= control target key start
LH: loop header
LB: loop body
LE: loop exit
PB: predicated region body
PF: predicated region fallthrough
CT: control target
= control target key end

     0   :  { %v116_v2 = vmov 0   ;;  %s168_s0 = inlined_call_operand.vmem [shape: f32[32,128], index: 0, kind: input, shape index: {}]   ;;  %s169_s1 = inlined_call_operand.vmem [shape: f32[32,1], index: 1, kind: input, shape index: {}]   ;;  %s170_s2 = inlined_call_operand.<no memory space> [shape: f32[1,1], index: 2, kind: input, shape index: {}]   ;;  %s171_s3 = inlined_call_operand.hbm [shape: f32[1,128], index: 3, kind: output, shape index: {}]  }
   0x1   :  { %v22_v0 = vld [vmem:[%s169_s1 + $0x10] sm:$0xff]  ;;  %v20_v1 = vld [vmem:[%s169_s1] sm:$0xff]  ;;  %85 = vset.pattern.permute.xlu1 %v116_v2  ;;  %84 = vset.pattern.permute.xlu0 %v116_v2 }
   0x2   :  { %9 = vsyncpa [#allocation4], 0  ;;  %36 = vperm.xlu1 %85, %v22_v0   ;;  %26 = vperm.xlu0 %84, %v20_v1   ;;  %v23_v3 = vld [vmem:[%s169_s1 + $0x18] sm:$0xff]  ;;  %v21_v4 = vld [vmem:[%s169_s1 + $0x8] sm:$0xff]  ;;  %v58_v25 = vstv %s170_s2  ;;  %s73_s5 = sshll.u32 %s171_s3, 4  ;;  %s74_s5 = int_to_ptr.hbm [resolvable:$true] %s73_s5 }
   0x3   :  { %v16_v7 = vld [vmem:[%s168_s0] sm:$0xff]  ;;  %v17_v8 = vld [vmem:[%s168_s0 + $0x8] sm:$0xff]  ;;  %v18_v9 = vld [vmem:[%s168_s0 + $0x10] sm:$0xff] }
   0x4   :  { %v19_v14 = vld [vmem:[%s168_s0 + $0x18] sm:$0xff]  ;;  %s117_s0 = smov [#allocation3]  }
   0x5   :  { %s71_s29 = sshll.u32 %s117_s0, 4  ;;  %s72_s29 = int_to_ptr.vmem [resolvable:$true] %s71_s29 }
   0xa   :  { %41 = vperm.xlu1 %85, %v23_v3   ;;  %31 = vperm.xlu0 %84, %v21_v4  }
  0x74   :  { %v37_v5 = vpop.permute.xlu1 %36  ;;  %v27_v6 = vpop.permute.xlu0 %26 }
  0x75   :  { %v44_v11 = vmul.f32 %v27_v6, %v16_v7  ;;  %v46_v15 = vmul.f32 %v37_v5, %v18_v9 }
  0x7c   :  { %v32_v10 = vpop.permute.xlu0 %31  ;;  %v42_v13 = vpop.permute.xlu1 %41 }
  0x7d   :  { %v45_v12 = vmul.f32 %v32_v10, %v17_v8  ;;  %v47_v17 = vmul.f32 %v42_v13, %v19_v14 }
  0x7f   :  { %v48_v16 = vadd.f32 %v45_v12, %v44_v11 }
  0x81   :  { %v49_v18 = vadd.f32 %v48_v16, %v46_v15 }
  0x83   :  { %v50_v19 = vadd.f32 %v49_v18, %v47_v17 }
  0x85   :  { %v51_v20 = vrot.slane %v50_v19, 4 }
  0x87   :  { %v52_v21 = vadd.f32 %v51_v20, %v50_v19 }
  0x89   :  { %v53_v22 = vrot.slane %v52_v21, 2 }
  0x8b   :  { %v54_v23 = vadd.f32 %v53_v22, %v52_v21 }
  0x8d   :  { %v55_v24 = vrot.slane %v54_v23, 1 }
  0x8f   :  { %v56_v26 = vadd.f32 %v55_v24, %v54_v23 }
  0x91   :  { %v59_v27 = vadd.f32 %v58_v25, %v56_v26 }
  0x93   :  { %v60_v28 = vsub.f32 0.0, %v59_v27 }
  0x95   :  { %v61_v29 = vmul.f32 1.442695, %v60_v28 }
  0x97   :  { %86 = vpow2.f32 %v61_v29 }
  0x9d   :  { %v87_v30 = vpop.eup %86 }
  0x9e   :  { %v63_v31 = vadd.f32 1.0, %v87_v30 }
  0xa0   :  { %88 = vrcp.f32 %v63_v31 }
  0xa6   :  { %v89_v32 = vpop.eup %88 }
  0xa7   :  { %65 = vst [vmem:[#allocation3] sm:$0x1] %v89_v32 }
  0xa8   :  { %76 = dma.vmem_to_hbm [thread:$0]  %s72_s29, 16, %s74_s5, [#allocation4]  }
  0xa9   :  { %114 = dma.done.wait [#allocation4], 16  }
  0xaa   :  { %115 = vsyncadd [#allocation4], 4294967280 }
  0xab   :  { %81 = vsyncpa [#allocation4], 1 }

</bundles_post_ra>
